<compile_context>
chip_gen: v5e
topology: v5e:2x2
jax: 0.10.0
libtpu: 0.0.40
codegen_flags: <defaults>
</compile_context>

<pallas_src>
import math
import functools

import jax
import jax.numpy as jnp
from jax.experimental import pallas as pl
from jax.experimental.pallas import tpu as pltpu


# ---------------------------- config ----------------------------
class Config:
    vocab_size = 64
    emb_dim = 32          # D
    n_head = 4            # H  -> head_dim = 8
    n_kv_heads = 2        # GQA: n_rep = 2
    n_layers = 2
    block_size = 8        # seq len S
    window_size = 4


# ---------------------------- Pallas kernels ----------------------------

def _attn_block_kernel(x_ref, rn_ref, wqkv_ref, wo_ref, cos_ref, sin_ref, p_ref,
                       o_ref, *, n_head, n_kv_heads, head_dim, window_size):
    """One batch element: x (S, D) -> x + Wo(attn(RoPE(QKV(RMSNorm(x)))))."""
    x = x_ref[...].astype(jnp.float32)                       # (S, D)
    S, D = x.shape
    kv_dim = n_kv_heads * head_dim
    n_rep = n_head // n_kv_heads

    # --- RMSNorm (f32) ---
    ms = jnp.mean(x * x, axis=-1, keepdims=True)
    h = x * jax.lax.rsqrt(ms + 1e-6) * rn_ref[...]           # (S, D)

    # --- fused QKV projection (bf16 operands, f32 accumulate) ---
    qkv = jnp.dot(h.astype(jnp.bfloat16), wqkv_ref[...],
                  preferred_element_type=jnp.float32)        # (S, D + 2*kv_dim)
    q = qkv[:, :D]
    k = qkv[:, D:D + kv_dim]
    v = qkv[:, D + kv_dim:]

    # --- RoPE, interleaved-pair convention ---
    # out[2i]   = x[2i]*cos - x[2i+1]*sin
    # out[2i+1] = x[2i+1]*cos + x[2i]*sin
    # pair-swap done on the MXU via a precomputed permutation matrix; sin table is
    # pre-sign-alternated, cos/sin tables are pre-tiled across heads.
    cos_q = cos_ref[...]                                     # (S, D)
    sin_q = sin_ref[...]                                     # (S, D)
    P = p_ref[...]                                           # (D, D) bf16 pair-swap
    q_sw = jnp.dot(q.astype(jnp.bfloat16), P,
                   preferred_element_type=jnp.float32)
    k_sw = jnp.dot(k.astype(jnp.bfloat16), P[:kv_dim, :kv_dim],
                   preferred_element_type=jnp.float32)
    q = q * cos_q + q_sw * sin_q
    k = k * cos_q[:, :kv_dim] + k_sw * sin_q[:, :kv_dim]

    # --- sliding-window causal mask, generated in-kernel ---
    row = jax.lax.broadcasted_iota(jnp.int32, (S, S), 0)
    col = jax.lax.broadcasted_iota(jnp.int32, (S, S), 1)
    allowed = (col <= row) & (col >= row - window_size)
    bias = jnp.where(allowed, 0.0, -1e30).astype(jnp.float32)

    # --- per-head attention (GQA: kv head = h // n_rep), unrolled (H is small) ---
    scale = 1.0 / math.sqrt(head_dim)
    wo = wo_ref[...]                                         # (D, D) bf16
    attn_out = jnp.zeros((S, D), jnp.float32)
    for hh in range(n_head):
        q_h = q[:, hh * head_dim:(hh + 1) * head_dim]
        kvh = hh // n_rep
        k_h = k[:, kvh * head_dim:(kvh + 1) * head_dim]
        v_h = v[:, kvh * head_dim:(kvh + 1) * head_dim]
        s = jnp.dot(q_h.astype(jnp.bfloat16), k_h.astype(jnp.bfloat16).T,
                    preferred_element_type=jnp.float32) * scale + bias
        s = s - jnp.max(s, axis=-1, keepdims=True)
        p = jnp.exp(s)
        p = p * pl.reciprocal(jnp.sum(p, axis=-1, keepdims=True), approx=True)
        ctx_h = jnp.dot(p.astype(jnp.bfloat16), v_h.astype(jnp.bfloat16),
                        preferred_element_type=jnp.float32)  # (S, head_dim)
        # ctx @ Wo == sum_h ctx_h @ Wo[h*Hd:(h+1)*Hd, :]  (avoids a lane concat)
        wo_h = wo[hh * head_dim:(hh + 1) * head_dim, :]
        attn_out = attn_out + jnp.dot(ctx_h.astype(jnp.bfloat16), wo_h,
                                      preferred_element_type=jnp.float32)

    # --- residual ---
    o_ref[...] = x + attn_out


def _mlp_block_kernel(x_ref, rn_ref, w1_ref, w2_ref, w3_ref, o_ref):
    """One batch element: x (S, D) -> x + fc3(silu(fc1(RMSNorm(x))) * fc2(RMSNorm(x)))."""
    x = x_ref[...].astype(jnp.float32)                       # (S, D)
    ms = jnp.mean(x * x, axis=-1, keepdims=True)
    h = (x * jax.lax.rsqrt(ms + 1e-6) * rn_ref[...]).astype(jnp.bfloat16)
    h1 = jnp.dot(h, w1_ref[...], preferred_element_type=jnp.float32)
    h2 = jnp.dot(h, w2_ref[...], preferred_element_type=jnp.float32)
    act = (h1 * jax.nn.sigmoid(h1)) * h2                     # silu in f32
    o_ref[...] = x + jnp.dot(act.astype(jnp.bfloat16), w3_ref[...],
                             preferred_element_type=jnp.float32)


def _head_kernel(x_ref, rn_ref, w_ref, o_ref):
    """Final RMSNorm + LM head: x (S, D) -> logits (S, V)."""
    x = x_ref[...].astype(jnp.float32)
    ms = jnp.mean(x * x, axis=-1, keepdims=True)
    h = (x * jax.lax.rsqrt(ms + 1e-6) * rn_ref[...]).astype(jnp.bfloat16)
    o_ref[...] = jnp.dot(h, w_ref[...], preferred_element_type=jnp.float32)


# ---------------------------- wrappers ----------------------------

def attn_block(x, rn_w, wqkv, wo, cos_q, sin_q, P, cfg):
    B, S, D = x.shape
    head_dim = D // cfg.n_head
    kv_dim = cfg.n_kv_heads * head_dim
    kernel = functools.partial(
        _attn_block_kernel,
        n_head=cfg.n_head, n_kv_heads=cfg.n_kv_heads,
        head_dim=head_dim, window_size=cfg.window_size)
    return pl.pallas_call(
        kernel,
        out_shape=jax.ShapeDtypeStruct((B, S, D), jnp.float32),
        grid=(B,),
        in_specs=[
            pl.BlockSpec((None, S, D), lambda b: (b, 0, 0)),          # x (per batch)
            pl.BlockSpec((1, D), lambda b: (0, 0)),                   # rmsnorm w
            pl.BlockSpec((D, D + 2 * kv_dim), lambda b: (0, 0)),      # fused Wqkv
            pl.BlockSpec((D, D), lambda b: (0, 0)),                   # Wo
            pl.BlockSpec((S, D), lambda b: (0, 0)),                   # rope cos
            pl.BlockSpec((S, D), lambda b: (0, 0)),                   # rope sin (signed)
            pl.BlockSpec((D, D), lambda b: (0, 0)),                   # pair-swap perm
        ],
        out_specs=pl.BlockSpec((None, S, D), lambda b: (b, 0, 0)),
        compiler_params=pltpu.CompilerParams(dimension_semantics=("parallel",)),
    )(x, rn_w, wqkv, wo, cos_q, sin_q, P)


def mlp_block(x, rn_w, w1, w2, w3):
    B, S, D = x.shape
    Hs = w1.shape[1]
    return pl.pallas_call(
        _mlp_block_kernel,
        out_shape=jax.ShapeDtypeStruct((B, S, D), jnp.float32),
        grid=(B,),
        in_specs=[
            pl.BlockSpec((None, S, D), lambda b: (b, 0, 0)),
            pl.BlockSpec((1, D), lambda b: (0, 0)),
            pl.BlockSpec((D, Hs), lambda b: (0, 0)),
            pl.BlockSpec((D, Hs), lambda b: (0, 0)),
            pl.BlockSpec((Hs, D), lambda b: (0, 0)),
        ],
        out_specs=pl.BlockSpec((None, S, D), lambda b: (b, 0, 0)),
        compiler_params=pltpu.CompilerParams(dimension_semantics=("parallel",)),
    )(x, rn_w, w1, w2, w3)


def lm_head(x, rn_w, w_out):
    B, S, D = x.shape
    V = w_out.shape[1]
    return pl.pallas_call(
        _head_kernel,
        out_shape=jax.ShapeDtypeStruct((B, S, V), jnp.float32),
        grid=(B,),
        in_specs=[
            pl.BlockSpec((None, S, D), lambda b: (b, 0, 0)),
            pl.BlockSpec((1, D), lambda b: (0, 0)),
            pl.BlockSpec((D, V), lambda b: (0, 0)),
        ],
        out_specs=pl.BlockSpec((None, S, V), lambda b: (b, 0, 0)),
        compiler_params=pltpu.CompilerParams(dimension_semantics=("parallel",)),
    )(x, rn_w, w_out)


# ---------------------------- params / forward ----------------------------

def init_params(cfg, key):
    D = cfg.emb_dim
    H = cfg.n_head
    Hd = D // H
    kv_dim = cfg.n_kv_heads * Hd
    Hs = int(2 / 3 * 4 * D)
    S = cfg.block_size

    keys = iter(jax.random.split(key, 2 + 5 * cfg.n_layers))

    def w(shape, fan_in, dtype=jnp.bfloat16):
        a = jax.random.normal(next(keys), shape, jnp.float32) / math.sqrt(fan_in)
        return a.astype(dtype)

    layers = []
    for _ in range(cfg.n_layers):
        layers.append(dict(
            rn1=jnp.ones((1, D), jnp.float32),
            rn2=jnp.ones((1, D), jnp.float32),
            wqkv=w((D, D + 2 * kv_dim), D),     # fused [Wq | Wk | Wv]
            wo=w((D, D), D),
            fc1=w((D, Hs), D),
            fc2=w((D, Hs), D),
            fc3=w((Hs, D), Hs),
        ))

    params = dict(
        emb=w((cfg.vocab_size, D), D, jnp.float32),
        fc_out=w((D, cfg.vocab_size), D),
        rn_f=jnp.ones((1, D), jnp.float32),
        layers=layers,
    )

    # RoPE tables (interleaved-pair / torchtune convention), expanded over the pair
    # dimension and tiled across heads so the kernel applies them with pure
    # elementwise ops + one pair-swap permutation matmul.
    freqs = 1.0 / (10000.0 ** (jnp.arange(0, Hd, 2, dtype=jnp.float32) / Hd))
    pos = jnp.arange(S, dtype=jnp.float32)
    ang = pos[:, None] * freqs[None, :]                            # (S, Hd//2)
    cos_h = jnp.repeat(jnp.cos(ang), 2, axis=-1)                   # (S, Hd)
    sin_h = jnp.stack([-jnp.sin(ang), jnp.sin(ang)], axis=-1).reshape(S, Hd)
    params['rope_cos'] = jnp.tile(cos_h, (1, H))                   # (S, D)
    params['rope_sin'] = jnp.tile(sin_h, (1, H))                   # (S, D)

    # pair-swap permutation: (x @ P)[:, j] = x[:, j ^ 1]
    idx = jnp.arange(D)
    P = jnp.zeros((D, D), jnp.float32).at[idx, idx ^ 1].set(1.0)
    params['rope_swap'] = P.astype(jnp.bfloat16)
    return params


def mistral_forward(params, tokens, cfg):
    B, S = tokens.shape
    # TODO(synk): token-embedding gather is a data-dependent row gather; kept in XLA.
    x = jnp.take(params['emb'], tokens, axis=0)                    # (B, S, D) f32

    cos = params['rope_cos'][:S]
    sin = params['rope_sin'][:S]
    for lp in params['layers']:
        x = attn_block(x, lp['rn1'], lp['wqkv'], lp['wo'], cos, sin,
                       params['rope_swap'], cfg)
        x = mlp_block(x, lp['rn2'], lp['fc1'], lp['fc2'], lp['fc3'])

    logits = lm_head(x, params['rn_f'], params['fc_out'])
    # TODO(synk): cross-entropy loss (y path) not implemented; forward uses y=None.
    return logits, None


if __name__ == "__main__":
    cfg = Config()
    key = jax.random.PRNGKey(0)
    pkey, tkey = jax.random.split(key)
    params = init_params(cfg, pkey)
    tokens = jax.random.randint(tkey, (2, cfg.block_size), 0, cfg.vocab_size,
                                dtype=jnp.int32)

    fwd = jax.jit(functools.partial(mistral_forward, cfg=cfg))
    logits, loss = fwd(params, tokens)
    jax.block_until_ready(logits)

    assert logits.shape == (2, cfg.block_size, cfg.vocab_size)
    assert bool(jnp.all(jnp.isfinite(logits)))
    print("KERNEL_OK")
</pallas_src>

<mosaic_0001>
module attributes {stable_mosaic.version = 11 : i64} {
  func.func @_mlp_block_kernel(%arg0: i32, %arg1: memref<1x8x32xf32, #tpu.memory_space<vmem>>, %arg2: memref<1x32xf32, #tpu.memory_space<vmem>>, %arg3: memref<32x85xbf16, #tpu.memory_space<vmem>>, %arg4: memref<32x85xbf16, #tpu.memory_space<vmem>>, %arg5: memref<85x32xbf16, #tpu.memory_space<vmem>>, %arg6: memref<1x8x32xf32, #tpu.memory_space<vmem>>) attributes {dimension_semantics = [#tpu.dimension_semantics<parallel>], iteration_bounds = array<i64: 2>, scalar_prefetch = 0 : i64, scratch_operands = 0 : i64, tpu.core_type = #tpu.core_type<tc>, window_params = [{transform_indices = @transform_0, window_bounds = array<i64: 1, 8, 32>}, {pipeline_mode = #tpu.pipeline_mode<synchronous>, transform_indices = @transform_1, window_bounds = array<i64: 1, 32>}, {pipeline_mode = #tpu.pipeline_mode<synchronous>, transform_indices = @transform_2, window_bounds = array<i64: 32, 85>}, {pipeline_mode = #tpu.pipeline_mode<synchronous>, transform_indices = @transform_3, window_bounds = array<i64: 32, 85>}, {pipeline_mode = #tpu.pipeline_mode<synchronous>, transform_indices = @transform_4, window_bounds = array<i64: 85, 32>}, {transform_indices = @transform_5, window_bounds = array<i64: 1, 8, 32>}]} {
    %c0 = arith.constant 0 : index
    %c0_0 = arith.constant 0 : index
    %c0_1 = arith.constant 0 : index
    %0 = vector.load %arg1[%c0, %c0_0, %c0_1] : memref<1x8x32xf32, #tpu.memory_space<vmem>>, vector<1x8x32xf32>
    %1 = vector.shape_cast %0 : vector<1x8x32xf32> to vector<8x32xf32>
    %2 = arith.mulf %1, %1 : vector<8x32xf32>
    %cst = arith.constant dense<0.000000e+00> : vector<8xf32>
    %3 = vector.multi_reduction <add>, %2, %cst [1] : vector<8x32xf32> to vector<8xf32>
    %4 = vector.shape_cast %3 : vector<8xf32> to vector<8x1xf32>
    %cst_2 = arith.constant 3.200000e+01 : f32
    %5 = vector.broadcast %cst_2 : f32 to vector<8x1xf32>
    %6 = arith.divf %4, %5 : vector<8x1xf32>
    %cst_3 = arith.constant 9.99999997E-7 : f32
    %7 = vector.broadcast %cst_3 : f32 to vector<8x1xf32>
    %8 = arith.addf %6, %7 : vector<8x1xf32>
    %9 = math.rsqrt %8 : vector<8x1xf32>
    %10 = vector.broadcast %9 : vector<8x1xf32> to vector<8x32xf32>
    %11 = arith.mulf %1, %10 : vector<8x32xf32>
    %c0_4 = arith.constant 0 : index
    %c0_5 = arith.constant 0 : index
    %12 = vector.load %arg2[%c0_4, %c0_5] : memref<1x32xf32, #tpu.memory_space<vmem>>, vector<1x32xf32>
    %13 = vector.broadcast %12 : vector<1x32xf32> to vector<8x32xf32>
    %14 = arith.mulf %11, %13 : vector<8x32xf32>
    %15 = arith.truncf %14 : vector<8x32xf32> to vector<8x32xbf16>
    %c0_6 = arith.constant 0 : index
    %c0_7 = arith.constant 0 : index
    %16 = vector.load %arg3[%c0_6, %c0_7] : memref<32x85xbf16, #tpu.memory_space<vmem>>, vector<32x85xbf16>
    %cst_8 = arith.constant dense<0.000000e+00> : vector<8x85xf32>
    %17 = tpu.matmul %15, %16, %cst_8 {dimension_numbers = #tpu.dot_dimension_numbers<[1], [0], [0], [1], [0, 0, 1, 1], [], []>} : vector<8x32xbf16>, vector<32x85xbf16>, vector<8x85xf32> -> vector<8x85xf32>
    %c0_9 = arith.constant 0 : index
    %c0_10 = arith.constant 0 : index
    %18 = vector.load %arg4[%c0_9, %c0_10] : memref<32x85xbf16, #tpu.memory_space<vmem>>, vector<32x85xbf16>
    %cst_11 = arith.constant dense<0.000000e+00> : vector<8x85xf32>
    %19 = tpu.matmul %15, %18, %cst_11 {dimension_numbers = #tpu.dot_dimension_numbers<[1], [0], [0], [1], [0, 0, 1, 1], [], []>} : vector<8x32xbf16>, vector<32x85xbf16>, vector<8x85xf32> -> vector<8x85xf32>
    %20 = arith.negf %17 : vector<8x85xf32>
    %21 = math.exp %20 : vector<8x85xf32>
    %cst_12 = arith.constant 1.000000e+00 : f32
    %22 = vector.broadcast %cst_12 : f32 to vector<8x85xf32>
    %23 = arith.addf %22, %21 : vector<8x85xf32>
    %24 = arith.divf %22, %23 : vector<8x85xf32>
    %25 = arith.mulf %17, %24 : vector<8x85xf32>
    %26 = arith.mulf %25, %19 : vector<8x85xf32>
    %27 = arith.truncf %26 : vector<8x85xf32> to vector<8x85xbf16>
    %c0_13 = arith.constant 0 : index
    %c0_14 = arith.constant 0 : index
    %28 = vector.load %arg5[%c0_13, %c0_14] : memref<85x32xbf16, #tpu.memory_space<vmem>>, vector<85x32xbf16>
    %cst_15 = arith.constant dense<0.000000e+00> : vector<8x32xf32>
    %29 = tpu.matmul %27, %28, %cst_15 {dimension_numbers = #tpu.dot_dimension_numbers<[1], [0], [0], [1], [0, 0, 1, 1], [], []>} : vector<8x85xbf16>, vector<85x32xbf16>, vector<8x32xf32> -> vector<8x32xf32>
    %30 = arith.addf %1, %29 : vector<8x32xf32>
    %c0_16 = arith.constant 0 : index
    %c0_17 = arith.constant 0 : index
    %c0_18 = arith.constant 0 : index
    %31 = vector.load %arg6[%c0_16, %c0_17, %c0_18] : memref<1x8x32xf32, #tpu.memory_space<vmem>>, vector<1x8x32xf32>
    %32 = vector.shape_cast %31 : vector<1x8x32xf32> to vector<8x32xf32>
    %33 = vector.shape_cast %30 : vector<8x32xf32> to vector<1x8x32xf32>
    tpu.vector_store %arg6[%c0_16, %c0_17, %c0_18], %33 {strides = array<i32>} : memref<1x8x32xf32, #tpu.memory_space<vmem>>, vector<1x8x32xf32>,
    return
  }
  func.func @transform_0(%arg0: i32) -> (i32, i32, i32) {
    %c0_i32 = arith.constant 0 : i32
    %c0_i32_0 = arith.constant 0 : i32
    %c0_i32_1 = arith.constant 0 : i32
    return %arg0, %c0_i32, %c0_i32_0 : i32, i32, i32
  }
  func.func @transform_1(%arg0: i32) -> (i32, i32) {
    %c0_i32 = arith.constant 0 : i32
    %c0_i32_0 = arith.constant 0 : i32
    %c0_i32_1 = arith.constant 0 : i32
    return %c0_i32, %c0_i32_0 : i32, i32
  }
  func.func @transform_2(%arg0: i32) -> (i32, i32) {
    %c0_i32 = arith.constant 0 : i32
    %c0_i32_0 = arith.constant 0 : i32
    %c0_i32_1 = arith.constant 0 : i32
    return %c0_i32, %c0_i32_0 : i32, i32
  }
  func.func @transform_3(%arg0: i32) -> (i32, i32) {
    %c0_i32 = arith.constant 0 : i32
    %c0_i32_0 = arith.constant 0 : i32
    %c0_i32_1 = arith.constant 0 : i32
    return %c0_i32, %c0_i32_0 : i32, i32
  }
  func.func @transform_4(%arg0: i32) -> (i32, i32) {
    %c0_i32 = arith.constant 0 : i32
    %c0_i32_0 = arith.constant 0 : i32
    %c0_i32_1 = arith.constant 0 : i32
    return %c0_i32, %c0_i32_0 : i32, i32
  }
  func.func @transform_5(%arg0: i32) -> (i32, i32, i32) {
    %c0_i32 = arith.constant 0 : i32
    %c0_i32_0 = arith.constant 0 : i32
    %c0_i32_1 = arith.constant 0 : i32
    return %arg0, %c0_i32, %c0_i32_0 : i32, i32, i32
  }
}

module attributes {stable_mosaic.version = 11 : i64} {
  func.func @_head_kernel(%arg0: i32, %arg1: memref<1x8x32xf32, #tpu.memory_space<vmem>>, %arg2: memref<1x32xf32, #tpu.memory_space<vmem>>, %arg3: memref<32x64xbf16, #tpu.memory_space<vmem>>, %arg4: memref<1x8x64xf32, #tpu.memory_space<vmem>>) attributes {dimension_semantics = [#tpu.dimension_semantics<parallel>], iteration_bounds = array<i64: 2>, scalar_prefetch = 0 : i64, scratch_operands = 0 : i64, tpu.core_type = #tpu.core_type<tc>, window_params = [{transform_indices = @transform_0, window_bounds = array<i64: 1, 8, 32>}, {pipeline_mode = #tpu.pipeline_mode<synchronous>, transform_indices = @transform_1, window_bounds = array<i64: 1, 32>}, {pipeline_mode = #tpu.pipeline_mode<synchronous>, transform_indices = @transform_2, window_bounds = array<i64: 32, 64>}, {transform_indices = @transform_3, window_bounds = array<i64: 1, 8, 64>}]} {
    %c0 = arith.constant 0 : index
    %c0_0 = arith.constant 0 : index
    %c0_1 = arith.constant 0 : index
    %0 = vector.load %arg1[%c0, %c0_0, %c0_1] : memref<1x8x32xf32, #tpu.memory_space<vmem>>, vector<1x8x32xf32>
    %1 = vector.shape_cast %0 : vector<1x8x32xf32> to vector<8x32xf32>
    %2 = arith.mulf %1, %1 : vector<8x32xf32>
    %cst = arith.constant dense<0.000000e+00> : vector<8xf32>
    %3 = vector.multi_reduction <add>, %2, %cst [1] : vector<8x32xf32> to vector<8xf32>
    %4 = vector.shape_cast %3 : vector<8xf32> to vector<8x1xf32>
    %cst_2 = arith.constant 3.200000e+01 : f32
    %5 = vector.broadcast %cst_2 : f32 to vector<8x1xf32>
    %6 = arith.divf %4, %5 : vector<8x1xf32>
    %cst_3 = arith.constant 9.99999997E-7 : f32
    %7 = vector.broadcast %cst_3 : f32 to vector<8x1xf32>
    %8 = arith.addf %6, %7 : vector<8x1xf32>
    %9 = math.rsqrt %8 : vector<8x1xf32>
    %10 = vector.broadcast %9 : vector<8x1xf32> to vector<8x32xf32>
    %11 = arith.mulf %1, %10 : vector<8x32xf32>
    %c0_4 = arith.constant 0 : index
    %c0_5 = arith.constant 0 : index
    %12 = vector.load %arg2[%c0_4, %c0_5] : memref<1x32xf32, #tpu.memory_space<vmem>>, vector<1x32xf32>
    %13 = vector.broadcast %12 : vector<1x32xf32> to vector<8x32xf32>
    %14 = arith.mulf %11, %13 : vector<8x32xf32>
    %15 = arith.truncf %14 : vector<8x32xf32> to vector<8x32xbf16>
    %c0_6 = arith.constant 0 : index
    %c0_7 = arith.constant 0 : index
    %16 = vector.load %arg3[%c0_6, %c0_7] : memref<32x64xbf16, #tpu.memory_space<vmem>>, vector<32x64xbf16>
    %cst_8 = arith.constant dense<0.000000e+00> : vector<8x64xf32>
    %17 = tpu.matmul %15, %16, %cst_8 {dimension_numbers = #tpu.dot_dimension_numbers<[1], [0], [0], [1], [0, 0, 1, 1], [], []>} : vector<8x32xbf16>, vector<32x64xbf16>, vector<8x64xf32> -> vector<8x64xf32>
    %c0_9 = arith.constant 0 : index
    %c0_10 = arith.constant 0 : index
    %c0_11 = arith.constant 0 : index
    %18 = vector.load %arg4[%c0_9, %c0_10, %c0_11] : memref<1x8x64xf32, #tpu.memory_space<vmem>>, vector<1x8x64xf32>
    %19 = vector.shape_cast %18 : vector<1x8x64xf32> to vector<8x64xf32>
    %20 = vector.shape_cast %17 : vector<8x64xf32> to vector<1x8x64xf32>
    tpu.vector_store %arg4[%c0_9, %c0_10, %c0_11], %20 {strides = array<i32>} : memref<1x8x64xf32, #tpu.memory_space<vmem>>, vector<1x8x64xf32>,
    return
  }
  func.func @transform_0(%arg0: i32) -> (i32, i32, i32) {
    %c0_i32 = arith.constant 0 : i32
    %c0_i32_0 = arith.constant 0 : i32
    %c0_i32_1 = arith.constant 0 : i32
    return %arg0, %c0_i32, %c0_i32_0 : i32, i32, i32
  }
  func.func @transform_1(%arg0: i32) -> (i32, i32) {
    %c0_i32 = arith.constant 0 : i32
    %c0_i32_0 = arith.constant 0 : i32
    %c0_i32_1 = arith.constant 0 : i32
    return %c0_i32, %c0_i32_0 : i32, i32
  }
  func.func @transform_2(%arg0: i32) -> (i32, i32) {
    %c0_i32 = arith.constant 0 : i32
    %c0_i32_0 = arith.constant 0 : i32
    %c0_i32_1 = arith.constant 0 : i32
    return %c0_i32, %c0_i32_0 : i32, i32
  }
  func.func @transform_3(%arg0: i32) -> (i32, i32, i32) {
    %c0_i32 = arith.constant 0 : i32
    %c0_i32_0 = arith.constant 0 : i32
    %c0_i32_1 = arith.constant 0 : i32
    return %arg0, %c0_i32, %c0_i32_0 : i32, i32, i32
  }
}

module attributes {stable_mosaic.version = 11 : i64} {
  func.func @_attn_block_kernel(%arg0: i32, %arg1: memref<1x8x32xf32, #tpu.memory_space<vmem>>, %arg2: memref<1x32xf32, #tpu.memory_space<vmem>>, %arg3: memref<32x64xbf16, #tpu.memory_space<vmem>>, %arg4: memref<32x32xbf16, #tpu.memory_space<vmem>>, %arg5: memref<8x32xf32, #tpu.memory_space<vmem>>, %arg6: memref<8x32xf32, #tpu.memory_space<vmem>>, %arg7: memref<32x32xbf16, #tpu.memory_space<vmem>>, %arg8: memref<1x8x32xf32, #tpu.memory_space<vmem>>) attributes {dimension_semantics = [#tpu.dimension_semantics<parallel>], iteration_bounds = array<i64: 2>, scalar_prefetch = 0 : i64, scratch_operands = 0 : i64, tpu.core_type = #tpu.core_type<tc>, window_params = [{transform_indices = @transform_0, window_bounds = array<i64: 1, 8, 32>}, {pipeline_mode = #tpu.pipeline_mode<synchronous>, transform_indices = @transform_1, window_bounds = array<i64: 1, 32>}, {pipeline_mode = #tpu.pipeline_mode<synchronous>, transform_indices = @transform_2, window_bounds = array<i64: 32, 64>}, {pipeline_mode = #tpu.pipeline_mode<synchronous>, transform_indices = @transform_3, window_bounds = array<i64: 32, 32>}, {pipeline_mode = #tpu.pipeline_mode<synchronous>, transform_indices = @transform_4, window_bounds = array<i64: 8, 32>}, {pipeline_mode = #tpu.pipeline_mode<synchronous>, transform_indices = @transform_5, window_bounds = array<i64: 8, 32>}, {pipeline_mode = #tpu.pipeline_mode<synchronous>, transform_indices = @transform_6, window_bounds = array<i64: 32, 32>}, {transform_indices = @transform_7, window_bounds = array<i64: 1, 8, 32>}]} {
    %c0 = arith.constant 0 : index
    %c0_0 = arith.constant 0 : index
    %c0_1 = arith.constant 0 : index
    %0 = vector.load %arg1[%c0, %c0_0, %c0_1] : memref<1x8x32xf32, #tpu.memory_space<vmem>>, vector<1x8x32xf32>
    %1 = vector.shape_cast %0 : vector<1x8x32xf32> to vector<8x32xf32>
    %2 = arith.mulf %1, %1 : vector<8x32xf32>
    %cst = arith.constant dense<0.000000e+00> : vector<8xf32>
    %3 = vector.multi_reduction <add>, %2, %cst [1] : vector<8x32xf32> to vector<8xf32>
    %4 = vector.shape_cast %3 : vector<8xf32> to vector<8x1xf32>
    %cst_2 = arith.constant 3.200000e+01 : f32
    %5 = vector.broadcast %cst_2 : f32 to vector<8x1xf32>
    %6 = arith.divf %4, %5 : vector<8x1xf32>
    %cst_3 = arith.constant 9.99999997E-7 : f32
    %7 = vector.broadcast %cst_3 : f32 to vector<8x1xf32>
    %8 = arith.addf %6, %7 : vector<8x1xf32>
    %9 = math.rsqrt %8 : vector<8x1xf32>
    %10 = vector.broadcast %9 : vector<8x1xf32> to vector<8x32xf32>
    %11 = arith.mulf %1, %10 : vector<8x32xf32>
    %c0_4 = arith.constant 0 : index
    %c0_5 = arith.constant 0 : index
    %12 = vector.load %arg2[%c0_4, %c0_5] : memref<1x32xf32, #tpu.memory_space<vmem>>, vector<1x32xf32>
    %13 = vector.broadcast %12 : vector<1x32xf32> to vector<8x32xf32>
    %14 = arith.mulf %11, %13 : vector<8x32xf32>
    %15 = arith.truncf %14 : vector<8x32xf32> to vector<8x32xbf16>
    %c0_6 = arith.constant 0 : index
    %c0_7 = arith.constant 0 : index
    %16 = vector.load %arg3[%c0_6, %c0_7] : memref<32x64xbf16, #tpu.memory_space<vmem>>, vector<32x64xbf16>
    %cst_8 = arith.constant dense<0.000000e+00> : vector<8x64xf32>
    %17 = tpu.matmul %15, %16, %cst_8 {dimension_numbers = #tpu.dot_dimension_numbers<[1], [0], [0], [1], [0, 0, 1, 1], [], []>} : vector<8x32xbf16>, vector<32x64xbf16>, vector<8x64xf32> -> vector<8x64xf32>
    %18 = vector.extract_strided_slice %17 {offsets = [0, 0], sizes = [8, 32], strides = [1, 1]} : vector<8x64xf32> to vector<8x32xf32>
    %19 = vector.extract_strided_slice %17 {offsets = [0, 32], sizes = [8, 16], strides = [1, 1]} : vector<8x64xf32> to vector<8x16xf32>
    %20 = vector.extract_strided_slice %17 {offsets = [0, 48], sizes = [8, 16], strides = [1, 1]} : vector<8x64xf32> to vector<8x16xf32>
    %c0_9 = arith.constant 0 : index
    %c0_10 = arith.constant 0 : index
    %21 = vector.load %arg5[%c0_9, %c0_10] : memref<8x32xf32, #tpu.memory_space<vmem>>, vector<8x32xf32>
    %c0_11 = arith.constant 0 : index
    %c0_12 = arith.constant 0 : index
    %22 = vector.load %arg6[%c0_11, %c0_12] : memref<8x32xf32, #tpu.memory_space<vmem>>, vector<8x32xf32>
    %c0_13 = arith.constant 0 : index
    %c0_14 = arith.constant 0 : index
    %23 = vector.load %arg7[%c0_13, %c0_14] : memref<32x32xbf16, #tpu.memory_space<vmem>>, vector<32x32xbf16>
    %24 = arith.truncf %18 : vector<8x32xf32> to vector<8x32xbf16>
    %cst_15 = arith.constant dense<0.000000e+00> : vector<8x32xf32>
    %25 = tpu.matmul %24, %23, %cst_15 {dimension_numbers = #tpu.dot_dimension_numbers<[1], [0], [0], [1], [0, 0, 1, 1], [], []>} : vector<8x32xbf16>, vector<32x32xbf16>, vector<8x32xf32> -> vector<8x32xf32>
    %26 = arith.truncf %19 : vector<8x16xf32> to vector<8x16xbf16>
    %27 = vector.extract_strided_slice %23 {offsets = [0, 0], sizes = [16, 16], strides = [1, 1]} : vector<32x32xbf16> to vector<16x16xbf16>
    %cst_16 = arith.constant dense<0.000000e+00> : vector<8x16xf32>
    %28 = tpu.matmul %26, %27, %cst_16 {dimension_numbers = #tpu.dot_dimension_numbers<[1], [0], [0], [1], [0, 0, 1, 1], [], []>} : vector<8x16xbf16>, vector<16x16xbf16>, vector<8x16xf32> -> vector<8x16xf32>
    %29 = arith.mulf %18, %21 : vector<8x32xf32>
    %30 = arith.mulf %25, %22 : vector<8x32xf32>
    %31 = arith.addf %29, %30 : vector<8x32xf32>
    %32 = vector.extract_strided_slice %21 {offsets = [0, 0], sizes = [8, 16], strides = [1, 1]} : vector<8x32xf32> to vector<8x16xf32>
    %33 = arith.mulf %19, %32 : vector<8x16xf32>
    %34 = vector.extract_strided_slice %22 {offsets = [0, 0], sizes = [8, 16], strides = [1, 1]} : vector<8x32xf32> to vector<8x16xf32>
    %35 = arith.mulf %28, %34 : vector<8x16xf32>
    %36 = arith.addf %33, %35 : vector<8x16xf32>
    %37 = tpu.iota {dimensions = array<i32: 0>} : vector<8x8xi32>
    %38 = tpu.iota {dimensions = array<i32: 1>} : vector<8x8xi32>
    %39 = arith.cmpi sle, %38, %37 : vector<8x8xi32>
    %c4_i32 = arith.constant 4 : i32
    %40 = vector.broadcast %c4_i32 : i32 to vector<8x8xi32>
    %41 = arith.subi %37, %40 : vector<8x8xi32>
    %42 = arith.cmpi sge, %38, %41 : vector<8x8xi32>
    %43 = arith.andi %39, %42 : vector<8x8xi1>
    %cst_17 = arith.constant 0.000000e+00 : f32
    %cst_18 = arith.constant -1.000000e+30 : f32
    %44 = vector.broadcast %cst_17 : f32 to vector<8x8xf32>
    %45 = vector.broadcast %cst_18 : f32 to vector<8x8xf32>
    %46 = arith.select %43, %44, %45 : vector<8x8xi1>, vector<8x8xf32>
    %c0_19 = arith.constant 0 : index
    %c0_20 = arith.constant 0 : index
    %47 = vector.load %arg4[%c0_19, %c0_20] : memref<32x32xbf16, #tpu.memory_space<vmem>>, vector<32x32xbf16>
    %cst_21 = arith.constant 0.000000e+00 : f32
    %48 = vector.broadcast %cst_21 : f32 to vector<8x32xf32>
    %49 = vector.extract_strided_slice %31 {offsets = [0, 0], sizes = [8, 8], strides = [1, 1]} : vector<8x32xf32> to vector<8x8xf32>
    %50 = vector.extract_strided_slice %36 {offsets = [0, 0], sizes = [8, 8], strides = [1, 1]} : vector<8x16xf32> to vector<8x8xf32>
    %51 = vector.extract_strided_slice %20 {offsets = [0, 0], sizes = [8, 8], strides = [1, 1]} : vector<8x16xf32> to vector<8x8xf32>
    %52 = arith.truncf %49 : vector<8x8xf32> to vector<8x8xbf16>
    %53 = arith.truncf %50 : vector<8x8xf32> to vector<8x8xbf16>
    %54 = tpu.transpose %53, [1, 0] : vector<8x8xbf16> -> vector<8x8xbf16>
    %cst_22 = arith.constant dense<0.000000e+00> : vector<8x8xf32>
    %55 = tpu.matmul %52, %54, %cst_22 {dimension_numbers = #tpu.dot_dimension_numbers<[1], [0], [0], [1], [0, 0, 1, 1], [], []>} : vector<8x8xbf16>, vector<8x8xbf16>, vector<8x8xf32> -> vector<8x8xf32>
    %cst_23 = arith.constant 0.353553385 : f32
    %56 = vector.broadcast %cst_23 : f32 to vector<8x8xf32>
    %57 = arith.mulf %55, %56 : vector<8x8xf32>
    %58 = arith.addf %57, %46 : vector<8x8xf32>
    %cst_24 = arith.constant dense<0xFF800000> : vector<8xf32>
    %59 = vector.multi_reduction <maximumf>, %58, %cst_24 [1] : vector<8x8xf32> to vector<8xf32>
    %60 = vector.shape_cast %59 : vector<8xf32> to vector<8x1xf32>
    %61 = vector.broadcast %60 : vector<8x1xf32> to vector<8x8xf32>
    %62 = arith.subf %58, %61 : vector<8x8xf32>
    %63 = math.exp %62 : vector<8x8xf32>
    %cst_25 = arith.constant dense<0.000000e+00> : vector<8xf32>
    %64 = vector.multi_reduction <add>, %63, %cst_25 [1] : vector<8x8xf32> to vector<8xf32>
    %65 = vector.shape_cast %64 : vector<8xf32> to vector<8x1xf32>
    %66 = tpu.reciprocal %65 {approx = true} : vector<8x1xf32> -> vector<8x1xf32>
    %67 = vector.broadcast %66 : vector<8x1xf32> to vector<8x8xf32>
    %68 = arith.mulf %63, %67 : vector<8x8xf32>
    %69 = arith.truncf %68 : vector<8x8xf32> to vector<8x8xbf16>
    %70 = arith.truncf %51 : vector<8x8xf32> to vector<8x8xbf16>
    %cst_26 = arith.constant dense<0.000000e+00> : vector<8x8xf32>
    %71 = tpu.matmul %69, %70, %cst_26 {dimension_numbers = #tpu.dot_dimension_numbers<[1], [0], [0], [1], [0, 0, 1, 1], [], []>} : vector<8x8xbf16>, vector<8x8xbf16>, vector<8x8xf32> -> vector<8x8xf32>
    %72 = vector.extract_strided_slice %47 {offsets = [0, 0], sizes = [8, 32], strides = [1, 1]} : vector<32x32xbf16> to vector<8x32xbf16>
    %73 = arith.truncf %71 : vector<8x8xf32> to vector<8x8xbf16>
    %cst_27 = arith.constant dense<0.000000e+00> : vector<8x32xf32>
    %74 = tpu.matmul %73, %72, %cst_27 {dimension_numbers = #tpu.dot_dimension_numbers<[1], [0], [0], [1], [0, 0, 1, 1], [], []>} : vector<8x8xbf16>, vector<8x32xbf16>, vector<8x32xf32> -> vector<8x32xf32>
    %75 = arith.addf %48, %74 : vector<8x32xf32>
    %76 = vector.extract_strided_slice %31 {offsets = [0, 8], sizes = [8, 8], strides = [1, 1]} : vector<8x32xf32> to vector<8x8xf32>
    %77 = vector.extract_strided_slice %36 {offsets = [0, 0], sizes = [8, 8], strides = [1, 1]} : vector<8x16xf32> to vector<8x8xf32>
    %78 = vector.extract_strided_slice %20 {offsets = [0, 0], sizes = [8, 8], strides = [1, 1]} : vector<8x16xf32> to vector<8x8xf32>
    %79 = arith.truncf %76 : vector<8x8xf32> to vector<8x8xbf16>
    %80 = arith.truncf %77 : vector<8x8xf32> to vector<8x8xbf16>
    %81 = tpu.transpose %80, [1, 0] : vector<8x8xbf16> -> vector<8x8xbf16>
    %cst_28 = arith.constant dense<0.000000e+00> : vector<8x8xf32>
    %82 = tpu.matmul %79, %81, %cst_28 {dimension_numbers = #tpu.dot_dimension_numbers<[1], [0], [0], [1], [0, 0, 1, 1], [], []>} : vector<8x8xbf16>, vector<8x8xbf16>, vector<8x8xf32> -> vector<8x8xf32>
    %cst_29 = arith.constant 0.353553385 : f32
    %83 = vector.broadcast %cst_29 : f32 to vector<8x8xf32>
    %84 = arith.mulf %82, %83 : vector<8x8xf32>
    %85 = arith.addf %84, %46 : vector<8x8xf32>
    %cst_30 = arith.constant dense<0xFF800000> : vector<8xf32>
    %86 = vector.multi_reduction <maximumf>, %85, %cst_30 [1] : vector<8x8xf32> to vector<8xf32>
    %87 = vector.shape_cast %86 : vector<8xf32> to vector<8x1xf32>
    %88 = vector.broadcast %87 : vector<8x1xf32> to vector<8x8xf32>
    %89 = arith.subf %85, %88 : vector<8x8xf32>
    %90 = math.exp %89 : vector<8x8xf32>
    %cst_31 = arith.constant dense<0.000000e+00> : vector<8xf32>
    %91 = vector.multi_reduction <add>, %90, %cst_31 [1] : vector<8x8xf32> to vector<8xf32>
    %92 = vector.shape_cast %91 : vector<8xf32> to vector<8x1xf32>
    %93 = tpu.reciprocal %92 {approx = true} : vector<8x1xf32> -> vector<8x1xf32>
    %94 = vector.broadcast %93 : vector<8x1xf32> to vector<8x8xf32>
    %95 = arith.mulf %90, %94 : vector<8x8xf32>
    %96 = arith.truncf %95 : vector<8x8xf32> to vector<8x8xbf16>
    %97 = arith.truncf %78 : vector<8x8xf32> to vector<8x8xbf16>
    %cst_32 = arith.constant dense<0.000000e+00> : vector<8x8xf32>
    %98 = tpu.matmul %96, %97, %cst_32 {dimension_numbers = #tpu.dot_dimension_numbers<[1], [0], [0], [1], [0, 0, 1, 1], [], []>} : vector<8x8xbf16>, vector<8x8xbf16>, vector<8x8xf32> -> vector<8x8xf32>
    %99 = vector.extract_strided_slice %47 {offsets = [8, 0], sizes = [8, 32], strides = [1, 1]} : vector<32x32xbf16> to vector<8x32xbf16>
    %100 = arith.truncf %98 : vector<8x8xf32> to vector<8x8xbf16>
    %cst_33 = arith.constant dense<0.000000e+00> : vector<8x32xf32>
    %101 = tpu.matmul %100, %99, %cst_33 {dimension_numbers = #tpu.dot_dimension_numbers<[1], [0], [0], [1], [0, 0, 1, 1], [], []>} : vector<8x8xbf16>, vector<8x32xbf16>, vector<8x32xf32> -> vector<8x32xf32>
    %102 = arith.addf %75, %101 : vector<8x32xf32>
    %103 = vector.extract_strided_slice %31 {offsets = [0, 16], sizes = [8, 8], strides = [1, 1]} : vector<8x32xf32> to vector<8x8xf32>
    %104 = vector.extract_strided_slice %36 {offsets = [0, 8], sizes = [8, 8], strides = [1, 1]} : vector<8x16xf32> to vector<8x8xf32>
    %105 = vector.extract_strided_slice %20 {offsets = [0, 8], sizes = [8, 8], strides = [1, 1]} : vector<8x16xf32> to vector<8x8xf32>
    %106 = arith.truncf %103 : vector<8x8xf32> to vector<8x8xbf16>
    %107 = arith.truncf %104 : vector<8x8xf32> to vector<8x8xbf16>
    %108 = tpu.transpose %107, [1, 0] : vector<8x8xbf16> -> vector<8x8xbf16>
    %cst_34 = arith.constant dense<0.000000e+00> : vector<8x8xf32>
    %109 = tpu.matmul %106, %108, %cst_34 {dimension_numbers = #tpu.dot_dimension_numbers<[1], [0], [0], [1], [0, 0, 1, 1], [], []>} : vector<8x8xbf16>, vector<8x8xbf16>, vector<8x8xf32> -> vector<8x8xf32>
    %cst_35 = arith.constant 0.353553385 : f32
    %110 = vector.broadcast %cst_35 : f32 to vector<8x8xf32>
    %111 = arith.mulf %109, %110 : vector<8x8xf32>
    %112 = arith.addf %111, %46 : vector<8x8xf32>
    %cst_36 = arith.constant dense<0xFF800000> : vector<8xf32>
    %113 = vector.multi_reduction <maximumf>, %112, %cst_36 [1] : vector<8x8xf32> to vector<8xf32>
    %114 = vector.shape_cast %113 : vector<8xf32> to vector<8x1xf32>
    %115 = vector.broadcast %114 : vector<8x1xf32> to vector<8x8xf32>
    %116 = arith.subf %112, %115 : vector<8x8xf32>
    %117 = math.exp %116 : vector<8x8xf32>
    %cst_37 = arith.constant dense<0.000000e+00> : vector<8xf32>
    %118 = vector.multi_reduction <add>, %117, %cst_37 [1] : vector<8x8xf32> to vector<8xf32>
    %119 = vector.shape_cast %118 : vector<8xf32> to vector<8x1xf32>
    %120 = tpu.reciprocal %119 {approx = true} : vector<8x1xf32> -> vector<8x1xf32>
    %121 = vector.broadcast %120 : vector<8x1xf32> to vector<8x8xf32>
    %122 = arith.mulf %117, %121 : vector<8x8xf32>
    %123 = arith.truncf %122 : vector<8x8xf32> to vector<8x8xbf16>
    %124 = arith.truncf %105 : vector<8x8xf32> to vector<8x8xbf16>
    %cst_38 = arith.constant dense<0.000000e+00> : vector<8x8xf32>
    %125 = tpu.matmul %123, %124, %cst_38 {dimension_numbers = #tpu.dot_dimension_numbers<[1], [0], [0], [1], [0, 0, 1, 1], [], []>} : vector<8x8xbf16>, vector<8x8xbf16>, vector<8x8xf32> -> vector<8x8xf32>
    %126 = vector.extract_strided_slice %47 {offsets = [16, 0], sizes = [8, 32], strides = [1, 1]} : vector<32x32xbf16> to vector<8x32xbf16>
    %127 = arith.truncf %125 : vector<8x8xf32> to vector<8x8xbf16>
    %cst_39 = arith.constant dense<0.000000e+00> : vector<8x32xf32>
    %128 = tpu.matmul %127, %126, %cst_39 {dimension_numbers = #tpu.dot_dimension_numbers<[1], [0], [0], [1], [0, 0, 1, 1], [], []>} : vector<8x8xbf16>, vector<8x32xbf16>, vector<8x32xf32> -> vector<8x32xf32>
    %129 = arith.addf %102, %128 : vector<8x32xf32>
    %130 = vector.extract_strided_slice %31 {offsets = [0, 24], sizes = [8, 8], strides = [1, 1]} : vector<8x32xf32> to vector<8x8xf32>
    %131 = vector.extract_strided_slice %36 {offsets = [0, 8], sizes = [8, 8], strides = [1, 1]} : vector<8x16xf32> to vector<8x8xf32>
    %132 = vector.extract_strided_slice %20 {offsets = [0, 8], sizes = [8, 8], strides = [1, 1]} : vector<8x16xf32> to vector<8x8xf32>
    %133 = arith.truncf %130 : vector<8x8xf32> to vector<8x8xbf16>
    %134 = arith.truncf %131 : vector<8x8xf32> to vector<8x8xbf16>
    %135 = tpu.transpose %134, [1, 0] : vector<8x8xbf16> -> vector<8x8xbf16>
    %cst_40 = arith.constant dense<0.000000e+00> : vector<8x8xf32>
    %136 = tpu.matmul %133, %135, %cst_40 {dimension_numbers = #tpu.dot_dimension_numbers<[1], [0], [0], [1], [0, 0, 1, 1], [], []>} : vector<8x8xbf16>, vector<8x8xbf16>, vector<8x8xf32> -> vector<8x8xf32>
    %cst_41 = arith.constant 0.353553385 : f32
    %137 = vector.broadcast %cst_41 : f32 to vector<8x8xf32>
    %138 = arith.mulf %136, %137 : vector<8x8xf32>
    %139 = arith.addf %138, %46 : vector<8x8xf32>
    %cst_42 = arith.constant dense<0xFF800000> : vector<8xf32>
    %140 = vector.multi_reduction <maximumf>, %139, %cst_42 [1] : vector<8x8xf32> to vector<8xf32>
    %141 = vector.shape_cast %140 : vector<8xf32> to vector<8x1xf32>
    %142 = vector.broadcast %141 : vector<8x1xf32> to vector<8x8xf32>
    %143 = arith.subf %139, %142 : vector<8x8xf32>
    %144 = math.exp %143 : vector<8x8xf32>
    %cst_43 = arith.constant dense<0.000000e+00> : vector<8xf32>
    %145 = vector.multi_reduction <add>, %144, %cst_43 [1] : vector<8x8xf32> to vector<8xf32>
    %146 = vector.shape_cast %145 : vector<8xf32> to vector<8x1xf32>
    %147 = tpu.reciprocal %146 {approx = true} : vector<8x1xf32> -> vector<8x1xf32>
    %148 = vector.broadcast %147 : vector<8x1xf32> to vector<8x8xf32>
    %149 = arith.mulf %144, %148 : vector<8x8xf32>
    %150 = arith.truncf %149 : vector<8x8xf32> to vector<8x8xbf16>
    %151 = arith.truncf %132 : vector<8x8xf32> to vector<8x8xbf16>
    %cst_44 = arith.constant dense<0.000000e+00> : vector<8x8xf32>
    %152 = tpu.matmul %150, %151, %cst_44 {dimension_numbers = #tpu.dot_dimension_numbers<[1], [0], [0], [1], [0, 0, 1, 1], [], []>} : vector<8x8xbf16>, vector<8x8xbf16>, vector<8x8xf32> -> vector<8x8xf32>
    %153 = vector.extract_strided_slice %47 {offsets = [24, 0], sizes = [8, 32], strides = [1, 1]} : vector<32x32xbf16> to vector<8x32xbf16>
    %154 = arith.truncf %152 : vector<8x8xf32> to vector<8x8xbf16>
    %cst_45 = arith.constant dense<0.000000e+00> : vector<8x32xf32>
    %155 = tpu.matmul %154, %153, %cst_45 {dimension_numbers = #tpu.dot_dimension_numbers<[1], [0], [0], [1], [0, 0, 1, 1], [], []>} : vector<8x8xbf16>, vector<8x32xbf16>, vector<8x32xf32> -> vector<8x32xf32>
    %156 = arith.addf %129, %155 : vector<8x32xf32>
    %157 = arith.addf %1, %156 : vector<8x32xf32>
    %c0_46 = arith.constant 0 : index
    %c0_47 = arith.constant 0 : index
    %c0_48 = arith.constant 0 : index
    %158 = vector.load %arg8[%c0_46, %c0_47, %c0_48] : memref<1x8x32xf32, #tpu.memory_space<vmem>>, vector<1x8x32xf32>
    %159 = vector.shape_cast %158 : vector<1x8x32xf32> to vector<8x32xf32>
    %160 = vector.shape_cast %157 : vector<8x32xf32> to vector<1x8x32xf32>
    tpu.vector_store %arg8[%c0_46, %c0_47, %c0_48], %160 {strides = array<i32>} : memref<1x8x32xf32, #tpu.memory_space<vmem>>, vector<1x8x32xf32>,
    return
  }
  func.func @transform_0(%arg0: i32) -> (i32, i32, i32) {
    %c0_i32 = arith.constant 0 : i32
    %c0_i32_0 = arith.constant 0 : i32
    %c0_i32_1 = arith.constant 0 : i32
    return %arg0, %c0_i32, %c0_i32_0 : i32, i32, i32
  }
  func.func @transform_1(%arg0: i32) -> (i32, i32) {
    %c0_i32 = arith.constant 0 : i32
    %c0_i32_0 = arith.constant 0 : i32
    %c0_i32_1 = arith.constant 0 : i32
    return %c0_i32, %c0_i32_0 : i32, i32
  }
  func.func @transform_2(%arg0: i32) -> (i32, i32) {
    %c0_i32 = arith.constant 0 : i32
    %c0_i32_0 = arith.constant 0 : i32
    %c0_i32_1 = arith.constant 0 : i32
    return %c0_i32, %c0_i32_0 : i32, i32
  }
  func.func @transform_3(%arg0: i32) -> (i32, i32) {
    %c0_i32 = arith.constant 0 : i32
    %c0_i32_0 = arith.constant 0 : i32
    %c0_i32_1 = arith.constant 0 : i32
    return %c0_i32, %c0_i32_0 : i32, i32
  }
  func.func @transform_4(%arg0: i32) -> (i32, i32) {
    %c0_i32 = arith.constant 0 : i32
    %c0_i32_0 = arith.constant 0 : i32
    %c0_i32_1 = arith.constant 0 : i32
    return %c0_i32, %c0_i32_0 : i32, i32
  }
  func.func @transform_5(%arg0: i32) -> (i32, i32) {
    %c0_i32 = arith.constant 0 : i32
    %c0_i32_0 = arith.constant 0 : i32
    %c0_i32_1 = arith.constant 0 : i32
    return %c0_i32, %c0_i32_0 : i32, i32
  }
  func.func @transform_6(%arg0: i32) -> (i32, i32) {
    %c0_i32 = arith.constant 0 : i32
    %c0_i32_0 = arith.constant 0 : i32
    %c0_i32_1 = arith.constant 0 : i32
    return %c0_i32, %c0_i32_0 : i32, i32
  }
  func.func @transform_7(%arg0: i32) -> (i32, i32, i32) {
    %c0_i32 = arith.constant 0 : i32
    %c0_i32_0 = arith.constant 0 : i32
    %c0_i32_1 = arith.constant 0 : i32
    return %arg0, %c0_i32, %c0_i32_0 : i32, i32, i32
  }
}

</mosaic_0001>

<bundles_post_ra>
// kernel: mistral_forward.6
= control target key start
LH: loop header
LB: loop body
LE: loop exit
PB: predicated region body
PF: predicated region fallthrough
CT: control target
= control target key end

     0   :  { %s576_s18 = smov 0   ;;  %s643_s0 = inlined_call_operand.vmem [shape: f32[2,8,32], index: 0, kind: input, shape index: {}]   ;;  %s644_s1 = inlined_call_operand.vmem [shape: f32[1,32], index: 1, kind: input, shape index: {}]   ;;  %s645_s2 = inlined_call_operand.vmem [shape: bf16[32,85], index: 2, kind: input, shape index: {}]   ;;  %s646_s3 = inlined_call_operand.vmem [shape: bf16[32,85], index: 3, kind: input, shape index: {}]   ;;  %s647_s4 = inlined_call_operand.vmem [shape: bf16[85,32], index: 4, kind: input, shape index: {}]   ;;  %s648_s5 = inlined_call_operand.vmem [shape: f32[2,8,32], index: 5, kind: output, shape index: {}]  }
   0x1 LB: > { %s459_s19 = sadd.s32 4294967295, %s542_s18   ;;  %p463_p0 = scmp.ge.s32.totalorder %s542_s18, 1  ;;  %s542_s18 = sphi %s576_s18, %s15_s18  }
   0x2   : > { %p186_p1 = scmp.lt.s32.totalorder %s542_s18, 3 }
   0x4   : > { %p187_p2 = pnand %p463_p0, %p186_p1 }
   0x5   : > { %p212_p3 = scmp.lt.s32.totalorder (!%p187_p2), %s459_s19, 1 }
   0x6   : > { %190 = sbr.rel (%p187_p2) target bundleno = 462 (0x1ce), region = 40 }
   0xb   : > { %s650_s19 = smov (!%p212_p3, %s459_s19), 1  ;;  %vm223_vm0 = vcmask 261120   ;;  %v544_v3 = vmov 32.0   ;;  %v509_v7 = vld [vmem:[%s645_s2 + $0x8] sm:$0xff]  ;;  %v508_v10 = vld [vmem:[%s645_s2] sm:$0xff]  ;;  %vm384_vm5 = vcmask 1041408  }
   0xc   : > { %s464_s20 = sshll.u32 %s650_s19, 3  ;;  %528 = vrcp.f32 %v544_v3  ;;  %v511_v8 = vld [vmem:[%s646_s3 + $0x8] sm:$0xff]  ;;  %278 = vmatpush.bf16.msra.mxu0 %v509_v7  ;;  %v510_v11 = vld [vmem:[%s646_s3] sm:$0xff]  ;;  %vm385_vm6 = vcmask 1042432   ;;  %v545_v31 = vmov 65535   ;;  %v515_v36 = vld [vmem:[%s647_s4 + $0x18] sm:$0xff] }
   0xd   : > { %s215_s23 = scalar_lea.vmem %s643_s0, %s464_s20  ;;  %307 = vmatpush.bf16.msra.mxu1 %v511_v8  ;;  %v527_v23 = vld [vmem:[%s644_s1] ss:$0 sm:$0xff]  ;;  %v346_v28 = vld [vmem:[%s647_s4 + $0x28] sm:$0x7]  ;;  %v386_v32 = vsel %vm384_vm5, 4294967295, %v545_v31  ;;  %v514_v37 = vld [vmem:[%s647_s4 + $0x10] sm:$0xff]  ;;  %s219_s26 = scalar_lea.vmem %s648_s5, %s464_s20 }
   0xe   : > { %v592_v0 = vld [vmem:[%s215_s23] sm:$0xff]  ;;  %v368_v29 = vunpack.c.l.b16 %v346_v28  ;;  %v387_v33 = vsel %vm385_vm6, %v386_v32, 0  ;;  %v513_v38 = vld [vmem:[%s647_s4 + $0x8] sm:$0xff]  ;;  %vm380_vm11 = vcmask 695296  }
   0xf   : > { %v222_v1 = vmul.f32 %v592_v0, %v592_v0  ;;  %v516_v35 = vld [vmem:[%s647_s4 + $0x20] sm:$0xff] }
  0x10   : > { %279 = vmatpush.bf16.msra.mxu0 %v508_v10  ;;  %v374_v30 = vpack.c.b16 %v368_v29, %v368_v29  ;;  %v512_v39 = vld [vmem:[%s647_s4] sm:$0xff] }
  0x11   : > { %v224_v2 = vsel %vm223_vm0, %v222_v1, 0.0  ;;  %308 = vmatpush.bf16.msra.mxu1 %v510_v11 }
  0x12   : > { %225 = vadd.xlane.f32.xlu0 %v224_v2  ;;  %v529_v4 = vpop.eup %528  ;;  %v389_v34 = vand.u32 %v387_v33, %v374_v30 }
  0x13   : > { %v228_v5 = vmul.f32 32.0, %v529_v4  ;;  %vm232_vm1 = vweird.f32 %v529_v4 }
  0x14   : > { %393 = vmatpush.bf16.msra.mxu2 %v389_v34 }
  0x15   : > { %v229_v6 = vsub.f32 1.0, %v228_v5 }
  0x17   : > { %v230_v9 = vmul.f32 %v529_v4, %v229_v6 }
  0x18   : > { %394 = vmatpush.bf16.msra.mxu2 %v516_v35 }
  0x19   : > { %v231_v12 = vadd.f32 %v529_v4, %v230_v9 }
  0x1b   : > { %v233_v13 = vsel %vm232_vm1, %v529_v4, %v231_v12 }
  0x1c   : > { %395 = vmatpush.bf16.msra.mxu2 %v515_v36 }
  0x20   : > { %396 = vmatpush.bf16.msra.mxu2 %v514_v37 }
  0x24   : > { %397 = vmatpush.bf16.msra.mxu2 %v513_v38 }
  0x28   : > { %398 = vmatpush.bf16.msra.mxu2 %v512_v39 }
  0x85   : > { %v226_v14 = vpop.xlane.xlu0 %225 }
  0x86   : > { %v234_v15 = vmul.f32 %v233_v13, %v226_v14 }
  0x88   : > { %v235_v16 = vadd.f32 1e-06, %v234_v15 }
  0x8a   : > { %530 = vrsqrt.f32 %v235_v16  ;;  %vm242_vm3 = vweird.f32 %v235_v16 }
  0x90   : > { %v531_v17 = vpop.eup %530 }
  0x91   : > { %v237_v18 = vmul.f32 %v531_v17, %v235_v16  ;;  %vm243_vm2 = vweird.f32 %v531_v17 }
  0x92   : > { %vm244_vm4 = vmor %vm242_vm3, %vm243_vm2 }
  0x93   : > { %v238_v19 = vmul.f32 %v531_v17, %v237_v18 }
  0x95   : > { %v239_v20 = vmul.f32 0.5, %v238_v19 }
  0x97   : > { %v240_v21 = vsub.f32 1.5, %v239_v20 }
  0x99   : > { %v241_v22 = vmul.f32 %v531_v17, %v240_v21 }
  0x9b   : > { %v245_v24 = vsel %vm244_vm4, %v531_v17, %v241_v22 }
  0x9c   : > { %v246_v25 = vmul.f32 %v245_v24, %v592_v0 }
  0x9e   : > { %v251_v26 = vmul.f32 %v527_v23, %v246_v25 }
  0xa0   : > { %v252_v27 = vpack.c.bf16 %v251_v26, %v251_v26 }
  0xa2   : > { %474 = vmatmul.msk.bf16.vlgmr.msra.gmra.mxu0 %vm223_vm0, %v252_v27  ;;  %483 = vmatmul.msk.bf16.vlgmr.msra.gmra.mxu1 %vm223_vm0, %v252_v27 }
 0x11f   : > { %v281_v40 = vpop.f32.mrf.mxu0  ;;  %v310_v41 = vpop.f32.mrf.mxu1 }
 0x120   : > { %v484_v42 = vmul.f32 -1.442695, %v281_v40 }
 0x122   : > { %532 = vpow2.f32 %v484_v42 }
 0x127   : > { %v283_v43 = vpop.f32.mrf.mxu0  ;;  %v312_v44 = vpop.f32.mrf.mxu1 }
 0x128   : > { %v533_v45 = vpop.eup %532 }
 0x129   : > { %v317_v46 = vadd.f32 1.0, %v533_v45 }
 0x12b   : > { %534 = vrcp.f32 %v317_v46  ;;  %v329_v50 = vand.u32 2147483648, %v317_v46  ;;  %v327_v52 = vand.u32 2147483647, %v317_v46  ;;  %vm323_vm8 = vweird.f32 %v317_v46 }
 0x12d   : > { %v330_v54 = vor.u32 1.1754944e-38, %v329_v50  ;;  %vm328_vm10 = vcmp.eq.f32.partialorder %v327_v52, 8.507059e+37 }
 0x131   : > { %v535_v47 = vpop.eup %534 }
 0x132   : > { %v319_v48 = vmul.f32 %v535_v47, %v317_v46  ;;  %vm324_vm7 = vweird.f32 %v535_v47 }
 0x133   : > { %vm325_vm9 = vmor %vm323_vm8, %vm324_vm7 }
 0x134   : > { %v320_v49 = vsub.f32 1.0, %v319_v48 }
 0x136   : > { %v321_v51 = vmul.f32 %v535_v47, %v320_v49 }
 0x138   : > { %v322_v53 = vadd.f32 %v535_v47, %v321_v51 }
 0x13a   : > { %v326_v55 = vsel %vm325_vm9, %v535_v47, %v322_v53 }
 0x13b   : > { %v331_v56 = vsel %vm328_vm10, %v330_v54, %v326_v55 }
 0x13c   : > { %v333_v57 = vmul.f32 %v331_v56, %v281_v40 }
 0x13e   : > { %v334_v58 = vmul.f32 %v333_v57, %v310_v41 }
 0x140   : > { %v335_v59 = vpack.c.bf16 %v334_v58, %v334_v58 }
 0x142   : > { %505 = vmatmul.msk.bf16.vlgmr.msra.gmra.mxu2 %vm380_vm11, %v335_v59 }
 0x1c5   : > { %v400_v60 = vpop.f32.mrf.mxu2 }
 0x1c6   : > { %v404_v61 = vadd.f32 %v400_v60, %v592_v0 }
 0x1c8   : > { %405 = vst.msk [vmem:[%s219_s26] sm:$0xff] %vm223_vm0, %v404_v61 }
 0x1cd   : > { %v402_v62 = vpop.f32.mrf.mxu2 }
 0x1ce PF: > { %s15_s18 = sadd.s32 1, %s542_s18  }
 0x1cf   : > { %p12_p4 = scmp.ge.s32.totalorder %s15_s18, 4  }
 0x1d1   :  { %14 = sbr.rel (!%p12_p4) target bundleno = 1 (0x1), region = 70 }

// kernel: mistral_forward.9
= control target key start
LH: loop header
LB: loop body
LE: loop exit
PB: predicated region body
PF: predicated region fallthrough
CT: control target
= control target key end

     0   :  { %8 = vsyncpa [#allocation3], 0  ;;  %s555_s0 = inlined_call_operand.vmem [shape: f32[2,8,32], index: 0, kind: input, shape index: {}]   ;;  %s556_s1 = inlined_call_operand.vmem [shape: f32[1,32], index: 1, kind: input, shape index: {}]   ;;  %s557_s2 = inlined_call_operand.vmem [shape: bf16[32,64], index: 2, kind: input, shape index: {}]   ;;  %s558_s3 = inlined_call_operand.hbm [shape: f32[2,8,64], index: 3, kind: output, shape index: {}]  }
   0x1   :  { %10 = vsyncpa [#allocation3 + $0x1], 0  ;;  %s459_s12 = smov 0   ;;  %s461_s13 = smov 0  }
   0x2   :  { %s463_s14 = smov 0   ;;  %s465_s15 = smov 0  }
   0x3 LB: > { %s480_s16 = sadd.s32 4294967295, %s436_s15   ;;  %s308_s17 = sadd.s32 4294967294, %s436_s15   ;;  %s436_s15 = sphi %s465_s15, %s564_s15   ;;  %s432_s14 = sphi %s463_s14, %s563_s14   ;;  %s428_s13 = sphi %s461_s13, %s562_s13   ;;  %s424_s12 = sphi %s459_s12, %s561_s12  }
   0x4   : > { %s484_s18 = sadd.s32 1, %s436_s15   ;;  %s91_s19 = sadd.s32 1, %s432_s14 }
   0x5   : > { %s88_s20 = ssub.s32 %s436_s15, %s484_s18  ;;  %p101_p0 = scmp.ne.s32.totalorder %s432_s14, %s428_s13 }
   0x6   : > { %p89_p1 = scmp.eq.s32.totalorder %s88_s20, 0  ;;  %p102_p2 = scmp.eq.s32.totalorder %s480_s16, 1 }
   0x7   : > { %p107_p3 = scmp.ne.s32.totalorder %s428_s13, %s424_s12  ;;  %p108_p4 = scmp.eq.s32.totalorder %s308_s17, 1 }
   0x8   : > { %s495_s21 = scalar_select %p89_p1, %s432_s14, %s91_s19  }
   0x9   : > { %p497_p5 = por %p102_p2, %p101_p0  ;;  %p501_p6 = por %p108_p4, %p107_p3 }
   0xa   : > { %p311_p7 = scmp.ge.s32.totalorder %s436_s15, 1  ;;  %p139_p8 = scmp.lt.s32.totalorder %s436_s15, 3 }
   0xc   : > { %p140_p9 = pnand %p311_p7, %p139_p8 }
   0xd   : > { %p162_p10 = scmp.lt.s32.totalorder (!%p140_p9), %s480_s16, 1  ;;  %s159_s8 = sand.u32 (!%p140_p9), 1, %s428_s13  }
   0xe   : > { %143 = sbr.rel (%p140_p9) target bundleno = 305 (0x131), region = 32  ;;  %s324_s9 = sshll.u32 (!%p140_p9), %s480_s16, 3 }
   0xf   : > { %s312_s10 = sshll.u32 (!%p140_p9), %s159_s8, 3  ;;  %s244_s19 = scalar_lea.hbm (!%p140_p9), %s558_s3, %s324_s9 }
  0x10   : > { %s161_s20 = scalar_lea.vmem (!%p140_p9), [#allocation2], %s312_s10  ;;  %s234_s26 = scalar_lea.sflag (!%p140_p9), [#allocation3], %s159_s8 }
  0x11   : > { %s394_s30 = scalar_lea.hbm (!%p140_p9), %s558_s3, 16 }
  0x13   : > { %s163_s24 = scalar_select %p162_p10, %s480_s16, 1  ;;  %vm169_vm0 = vcmask 261120   ;;  %v438_v3 = vmov 32.0   ;;  %v328_v7 = vld [vmem:[%s557_s2 + $0x8] sm:$0xff]  ;;  %v327_v9 = vld [vmem:[%s557_s2] sm:$0xff]  ;;  %vm231_vm5 = vcmask 523264  }
  0x14   : > { %370 = vrcp.f32 %v438_v3  ;;  %224 = vmatpush.bf16.msra.mxu0 %v328_v7  ;;  %v369_v21 = vld [vmem:[%s556_s1] ss:$0 sm:$0xff] }
  0x15   : > { %s313_s25 = sshll.u32 %s163_s24, 3  ;;  %s246_s24 = sshll.u32 %s161_s20, 4  ;;  %s247_s24 = int_to_ptr.vmem [resolvable:$true] %s246_s24 }
  0x16   : > { %s165_s28 = scalar_lea.vmem %s555_s0, %s313_s25  ;;  %s248_s25 = sshll.u32 %s244_s19, 4  ;;  %s249_s25 = int_to_ptr.hbm [resolvable:$true] %s248_s25 }
  0x17   : > { %v167_v0 = vld [vmem:[%s165_s28] sm:$0xff]  ;;  %s388_s27 = sshra.s32 %s249_s25, 4  ;;  %s389_s27 = int_to_ptr.hbm [resolvable:$true] %s388_s27 }
  0x18   : > { %v168_v1 = vmul.f32 %v167_v0, %v167_v0  ;;  %225 = vmatpush.bf16.msra.mxu0 %v327_v9  ;;  %s390_s28 = scalar_lea.hbm %s389_s27, 8  ;;  %p395_p0 = scmp.lt.s32.totalorder %s389_s27, %s558_s3 }
  0x19   : > { %p391_p11 = scmp.ne.s32.totalorder %s389_s27, %s390_s28  ;;  %p396_p1 = scmp.lt.s32.totalorder %s394_s30, %s390_s28 }
  0x1a   : > { %v170_v2 = vsel %vm169_vm0, %v168_v1, 0.0  ;;  %v371_v4 = vpop.eup %370 }
  0x1b   : > { %171 = vadd.xlane.f32.xlu0 %v170_v2  ;;  %v174_v5 = vmul.f32 32.0, %v371_v4  ;;  %vm178_vm1 = vweird.f32 %v371_v4  ;;  %p392_p12 = pnand %p391_p11, %p497_p5  ;;  %p397_p2 = por %p396_p1, %p395_p0 }
  0x1d   : > { %v175_v6 = vsub.f32 1.0, %v174_v5  ;;  %p393_p13 = pneg %p392_p12 }
  0x1f   : > { %v176_v8 = vmul.f32 %v371_v4, %v175_v6  ;;  %p398_p3 = pnand %p397_p2, %p393_p13 }
  0x21   : > { %v177_v10 = vadd.f32 %v371_v4, %v176_v8 }
  0x23   : > { %v179_v11 = vsel %vm178_vm1, %v371_v4, %v177_v10 }
  0x8e   : > { %v172_v12 = vpop.xlane.xlu0 %171 }
  0x8f   : > { %v180_v13 = vmul.f32 %v179_v11, %v172_v12 }
  0x91   : > { %v181_v14 = vadd.f32 1e-06, %v180_v13 }
  0x93   : > { %372 = vrsqrt.f32 %v181_v14  ;;  %vm188_vm3 = vweird.f32 %v181_v14 }
  0x99   : > { %v373_v15 = vpop.eup %372 }
  0x9a   : > { %v183_v16 = vmul.f32 %v373_v15, %v181_v14  ;;  %vm189_vm2 = vweird.f32 %v373_v15 }
  0x9b   : > { %vm190_vm4 = vmor %vm188_vm3, %vm189_vm2 }
  0x9c   : > { %v184_v17 = vmul.f32 %v373_v15, %v183_v16 }
  0x9e   : > { %v185_v18 = vmul.f32 0.5, %v184_v17 }
  0xa0   : > { %v186_v19 = vsub.f32 1.5, %v185_v18 }
  0xa2   : > { %v187_v20 = vmul.f32 %v373_v15, %v186_v19 }
  0xa4   : > { %v191_v22 = vsel %vm190_vm4, %v373_v15, %v187_v20 }
  0xa5   : > { %v192_v23 = vmul.f32 %v191_v22, %v167_v0 }
  0xa7   : > { %v197_v24 = vmul.f32 %v369_v21, %v192_v23 }
  0xa9   : > { %v198_v25 = vpack.c.bf16 %v197_v24, %v197_v24 }
  0xab   : > { %322 = vmatmul.msk.bf16.vlgmr.msra.gmra.mxu0 %vm169_vm0, %v198_v25 }
 0x128   : > { %v227_v26 = vpop.f32.mrf.mxu0 }
 0x129   : > { %232 = vst.msk [vmem:[%s161_s20] sm:$0xff] %vm231_vm5, %v227_v26 }
 0x12a   : > { %401 = shalt.err (!%p398_p3)
}
 0x12b   : > { %329 = dma.vmem_to_hbm [thread:$0]  (%p497_p5), %s247_s24, 128, %s249_s25, %s234_s26  }
 0x130   : > { %v229_v27 = vpop.f32.mrf.mxu0 }
 0x131 PF: > { %p335_p4 = scmp.ge.s32.totalorder %s436_s15, 2  ;;  %s260_s6 = sand.u32 1, %s424_s12  }
 0x132   : > { %s261_s7 = scalar_lea.sflag [#allocation3], %s260_s6 }
 0x133   : > { %p332_p7 = pnand %p335_p4, %p501_p6 }
 0x135   : > { %p333_p8 = pneg %p332_p7 }
 0x137   : > { %419 = dma.done.wait (%p333_p8), %s261_s7, 128  }
 0x138   : > { %421 = vsyncadd (%p333_p8), %s261_s7, 4294967168  ;;  %p13_p9 = scmp.ge.s32.totalorder %s484_s18, 4   ;;  %s561_s12 = smov %s428_s13 }
 0x139   : > { %s562_s13 = smov %s432_s14  ;;  %s563_s14 = smov %s495_s21 }
 0x13a   : > { %s564_s15 = smov %s484_s18  ;;  %15 = sbr.rel (!%p13_p9) target bundleno = 3 (0x3), region = 67 }
 0x13f   :  { %267 = vsyncpa [#allocation3], 1 }
 0x140   :  { %269 = vsyncpa [#allocation3 + $0x1], 1 }

// kernel: mistral_forward.5
= control target key start
LH: loop header
LB: loop body
LE: loop exit
PB: predicated region body
PF: predicated region fallthrough
CT: control target
= control target key end

     0   :  { %s916_s24 = smov 0   ;;  %s1027_s0 = inlined_call_operand.vmem [shape: f32[2,8,32], index: 0, kind: input, shape index: {}]   ;;  %s1028_s1 = inlined_call_operand.vmem [shape: f32[1,32], index: 1, kind: input, shape index: {}]   ;;  %s1029_s2 = inlined_call_operand.vmem [shape: bf16[32,64], index: 2, kind: input, shape index: {}]   ;;  %s1030_s3 = inlined_call_operand.vmem [shape: bf16[32,32], index: 3, kind: input, shape index: {}]   ;;  %s1031_s4 = inlined_call_operand.vmem [shape: f32[8,32], index: 4, kind: input, shape index: {}]   ;;  %s1032_s5 = inlined_call_operand.vmem [shape: f32[8,32], index: 5, kind: input, shape index: {}]   ;;  %s1033_s6 = inlined_call_operand.vmem [shape: bf16[32,32], index: 6, kind: input, shape index: {}]   ;;  %s1034_s7 = inlined_call_operand.vmem [shape: f32[2,8,32], index: 7, kind: output, shape index: {}]  }
   0x1 LB: > { %s774_s25 = sadd.s32 4294967295, %s864_s24   ;;  %p778_p0 = scmp.ge.s32.totalorder %s864_s24, 1  ;;  %s864_s24 = sphi %s916_s24, %s17_s24  }
   0x2   : > { %p236_p1 = scmp.lt.s32.totalorder %s864_s24, 3 }
   0x4   : > { %p237_p2 = pnand %p778_p0, %p236_p1 }
   0x5   : > { %p266_p3 = scmp.lt.s32.totalorder (!%p237_p2), %s774_s25, 1  ;;  %s867_s17 = smov (!%p237_p2), 32  }
   0x6   : > { %240 = sbr.rel (%p237_p2) target bundleno = 1976 (0x7b8), region = 48  ;;  %s868_s20 = smov (!%p237_p2), 96  }
   0x7   : > { %s869_s21 = smov (!%p237_p2), 80   ;;  %s870_s27 = smov (!%p237_p2), 120  }
   0x8   : > { %s871_s28 = smov (!%p237_p2), 88   ;;  %s874_s30 = smov (!%p237_p2), 112  }
   0x9   : > { %s875_s12 = smov (!%p237_p2), 72  }
   0xb   : > { %s1036_s25 = smov (!%p266_p3, %s774_s25), 1  ;;  %vm277_vm0 = vcmask 261120   ;;  %v866_v3 = vmov 32.0   ;;  %v816_v7 = vld [vmem:[%s1029_s2 + $0x8] sm:$0xff]  ;;  %v815_v9 = vld [vmem:[%s1029_s2] sm:$0xff]  ;;  %vm377_vm5 = vcmask 130048   ;;  %v408_v55 = vlaneseq }
   0xc   : > { %s779_s26 = sshll.u32 %s1036_s25, 3  ;;  %838 = vrcp.f32 %v866_v3  ;;  %332 = vmatpush.bf16.msra.mxu0 %v816_v7  ;;  %v339_v11 = vld [vmem:[%s1031_s4] sm:$0xff]  ;;  %v818_v12 = vld [vmem:[%s1033_s6 + $0x8] sm:$0xff]  ;;  %vm465_vm6 = vcmask 1043456   ;;  %vm426_vm7 = vcmask 64512  }
   0xd   : > { %s269_s29 = scalar_lea.vmem %s1027_s0, %s779_s26  ;;  %v817_v13 = vld [vmem:[%s1033_s6] sm:$0xff]  ;;  %398 = vrot.lane.b32.xlu1 %v339_v11, %s867_s17  ;;  %367 = vmatpush.bf16.msra.mxu1 %v818_v12  ;;  %v409_v56 = vshrl.u32 %v408_v55, 7  ;;  %v411_v57 = vand.u32 127, %v408_v55  ;;  %v873_v63 = vmov -1e+30   ;;  %s273_s19 = scalar_lea.vmem %s1034_s7, %s779_s26 }
   0xe   : > { %v932_v0 = vld [vmem:[%s269_s29] sm:$0xff]  ;;  %388 = vmatpush.bf16.msra.mxu2 %v817_v13  ;;  %s872_s29 = smov 104  }
   0xf   : > { %v276_v1 = vmul.f32 %v932_v0, %v932_v0  ;;  %v837_v24 = vld [vmem:[%s1028_s1] ss:$0 sm:$0xff]  ;;  %v800_v58 = vadd.s32 4294967292, %v409_v56  ;;  %vm412_vm8 = vcmp.le.s32.totalorder %v411_v57, %v409_v56 }
  0x10   : > { %333 = vmatpush.bf16.msra.mxu0 %v815_v9  ;;  %v340_v35 = vld [vmem:[%s1032_s5] sm:$0xff] }
  0x11   : > { %v278_v2 = vsel %vm277_vm0, %v276_v1, 0.0  ;;  %368 = vmatpush.bf16.msra.mxu1 %v817_v13  ;;  %vm414_vm9 = vcmp.ge.s32.totalorder %v411_v57, %v800_v58 }
  0x12   : > { %279 = vadd.xlane.f32.xlu0 %v278_v2  ;;  %v839_v4 = vpop.eup %838  ;;  %vm415_vm10 = vmand %vm412_vm8, %vm414_vm9 }
  0x13   : > { %v282_v5 = vmul.f32 32.0, %v839_v4  ;;  %vm286_vm1 = vweird.f32 %v839_v4  ;;  %v975_v1 = vsel %vm415_vm10, 0.0, %v873_v63 }
  0x15   : > { %v283_v6 = vsub.f32 1.0, %v282_v5 }
  0x17   : > { %v284_v8 = vmul.f32 %v839_v4, %v283_v6 }
  0x19   : > { %v285_v10 = vadd.f32 %v839_v4, %v284_v8 }
  0x1b   : > { %v287_v14 = vsel %vm286_vm1, %v839_v4, %v285_v10 }
  0x7f   : > { %v399_v45 = vpop.permute.xlu1 %398 }
  0x85   : > { %v280_v15 = vpop.xlane.xlu0 %279 }
  0x86   : > { %v288_v16 = vmul.f32 %v287_v14, %v280_v15  ;;  %v417_v14 = vld [vmem:[%s1030_s3] sm:$0xf] }
  0x87   : > { %v556_v15 = vsel %vm465_vm6, %v417_v14, 0 }
  0x88   : > { %v289_v17 = vadd.f32 1e-06, %v288_v16 }
  0x8a   : > { %840 = vrsqrt.f32 %v289_v17  ;;  %vm296_vm3 = vweird.f32 %v289_v17 }
  0x90   : > { %v841_v18 = vpop.eup %840 }
  0x91   : > { %v291_v19 = vmul.f32 %v841_v18, %v289_v17  ;;  %vm297_vm2 = vweird.f32 %v841_v18 }
  0x92   : > { %vm298_vm4 = vmor %vm296_vm3, %vm297_vm2 }
  0x93   : > { %v292_v20 = vmul.f32 %v841_v18, %v291_v19 }
  0x95   : > { %v293_v21 = vmul.f32 0.5, %v292_v20 }
  0x97   : > { %v294_v22 = vsub.f32 1.5, %v293_v21 }
  0x99   : > { %v295_v23 = vmul.f32 %v841_v18, %v294_v22 }
  0x9b   : > { %v299_v25 = vsel %vm298_vm4, %v841_v18, %v295_v23 }
  0x9c   : > { %v300_v26 = vmul.f32 %v299_v25, %v932_v0 }
  0x9e   : > { %v305_v27 = vmul.f32 %v837_v24, %v300_v26 }
  0xa0   : > { %v306_v28 = vpack.c.bf16 %v305_v27, %v305_v27 }
  0xa2   : > { %789 = vmatmul.msk.bf16.vlgmr.msra.gmra.mxu0 %vm277_vm0, %v306_v28 }
 0x11f   : > { %v335_v29 = vpop.f32.mrf.mxu0 }
 0x120   : > { %v958_v30 = vpack.c.bf16 %v335_v29, %v335_v29  ;;  %v394_v37 = vmul.f32 %v339_v11, %v335_v29  ;;  %v401_v46 = vmul.f32 %v399_v45, %v335_v29 }
 0x122   : > { %375 = vrot.lane.b32.xlu0 %v958_v30, %s868_s20  ;;  %798 = vmatmul.msk.bf16.vlgmr.msra.gmra.mxu1 %vm277_vm0, %v958_v30 }
 0x127   : > { %v337_v31 = vpop.f32.mrf.mxu0 }
 0x12a   : > { %460 = vrot.lane.b32.xlu0 %v958_v30, %s869_s21 }
 0x194   : > { %v376_v32 = vpop.permute.xlu0 %375 }
 0x195   : > { %799 = vmatmul.msk.bf16.vlgmr.msra.gmra.mxu2 %vm377_vm5, %v376_v32 }
 0x19c   : > { %v461_v33 = vpop.permute.xlu0 %460 }
 0x19d   : > { %v467_v34 = vsel %vm465_vm6, %v461_v33, 0 }
 0x19e   : > { %476 = vmatpush.bf16.msrb.mxu2 %v467_v34  ;;  %526 = vmatpush.bf16.msrb.mxu1 %v467_v34 }
 0x19f   : > { %v370_v36 = vpop.f32.mrf.mxu1 }
 0x1a0   : > { %v395_v38 = vmul.f32 %v370_v36, %v340_v35 }
 0x1a2   : > { %v396_v39 = vadd.f32 %v395_v38, %v394_v37  ;;  %565 = vmatpush.bf16.msra.mxu2 %v556_v15 }
 0x1a4   : > { %v421_v40 = vpack.c.bf16 %v396_v39, %v396_v39  ;;  %v418_v39 = vld [vmem:[%s1030_s3 + $0x4] sm:$0xf] }
 0x1a6   : > { %484 = vrot.lane.b32.xlu0 %v421_v40, %s870_s27 }
 0x1a7   : > { %v372_v41 = vpop.f32.mrf.mxu1 }
 0x218   : > { %v390_v42 = vpop.f32.mrf.mxu2  ;;  %v485_v52 = vpop.permute.xlu0 %484 }
 0x219   : > { %v402_v43 = vmul.f32 %v390_v42, %v340_v35 }
 0x21b   : > { %404 = vrot.lane.b32.xlu1 %v402_v43, %s867_s17 }
 0x220   : > { %v392_v44 = vpop.f32.mrf.mxu2 }
 0x28d   : > { %v405_v47 = vpop.permute.xlu1 %404 }
 0x28e   : > { %v407_v48 = vadd.f32 %v405_v47, %v401_v46 }
 0x290   : > { %v422_v49 = vpack.c.bf16 %v407_v48, %v407_v48 }
 0x292   : > { %424 = vrot.lane.b32.xlu2 %v422_v49, %s868_s20  ;;  %573 = vrot.lane.b32.xlu0 %v422_v49, %s871_s28 }
 0x29a   : > { %650 = vrot.lane.b32.xlu0 %v421_v40, %s872_s29 }
 0x2ec   : > { %v425_v50 = vpop.permute.xlu2 %424 }
 0x2ed   : > { %v431_v51 = vsel %vm426_vm7, %v425_v50, 0 }
 0x2ee   : > { %440 = vmatpush.bf16.xpose.msra.mxu3 %v431_v51  ;;  %496 = vmatpush.bf16.xpose.msrb.mxu0 %v431_v51 }
 0x2f5   : > { %801 = vmatmul.msk.bf16.vlgmr.msra.gmra.mxu3 %vm426_vm7, %v421_v40  ;;  %803 = vmatmul.msk.bf16.vlgmr.msrb.gmra.mxu0 %vm426_vm7, %v485_v52 }
 0x304   : > { %v574_v53 = vpop.permute.xlu0 %573 }
 0x305   : > { %v579_v54 = vsel %vm426_vm7, %v574_v53, 0 }
 0x306   : > { %588 = vmatpush.bf16.xpose.msra.mxu0 %v579_v54 }
 0x30c   : > { %v651_v38 = vpop.permute.xlu0 %650 }
 0x372   : > { %v498_v59 = vpop.f32.mrf.mxu0 }
 0x373   : > { %v502_v10 = vmul.f32 0.35355338, %v498_v59 }
 0x375   : > { %v503_v12 = vadd.f32 %v502_v10, %v975_v1  ;;  %v420_v10 = vld [vmem:[%s1030_s3 + $0xc] sm:$0xf] }
 0x377   : > { %v504_v13 = vsel %vm426_vm7, %v503_v12, -inf }
 0x378   : > { %v442_v60 = vpop.f32.mrf.mxu3 }
 0x379   : > { %v446_v61 = vmul.f32 0.35355338, %v442_v60 }
 0x37a   : > { %v500_v62 = vpop.f32.mrf.mxu0 }
 0x37b   : > { %v447_v2 = vadd.f32 %v446_v61, %v975_v1 }
 0x37d   : > { %v448_v3 = vsel %vm426_vm7, %v447_v2, -inf }
 0x37e   : > { %449 = vmax.xlane.f32.xlu2 %v448_v3 }
 0x380   : > { %v444_v4 = vpop.f32.mrf.mxu3 }
 0x396   : > { %571 = vrot.lane.b32.xlu2 %v421_v40, %s874_s30  ;;  %v537_v40 = vsel %vm465_vm6, %v418_v39, 0 }
 0x397   : > { %546 = vmatpush.bf16.msrb.mxu3 %v537_v40 }
 0x3f1   : > { %v450_v5 = vpop.xlane.xlu2 %449 }
 0x3f2   : > { %v451_v6 = vsub.f32 %v447_v2, %v450_v5 }
 0x3f4   : > { %v452_v7 = vmul.f32 1.442695, %v451_v6 }
 0x3f6   : > { %842 = vpow2.f32 %v452_v7 }
 0x3f9   : > { %v572_v8 = vpop.permute.xlu2 %571 }
 0x3fa   : > { %807 = vmatmul.msk.bf16.vlgmr.msra.gmra.mxu0 %vm426_vm7, %v572_v8 }
 0x3fc   : > { %v843_v9 = vpop.eup %842 }
 0x3fd   : > { %v454_v11 = vsel %vm426_vm7, %v843_v9, 0.0 }
 0x3fe   : > { %455 = vadd.xlane.f32.xlu1 %v454_v11 }
 0x406   : > { %505 = vmax.xlane.f32.xlu1 %v504_v13 }
 0x471   : > { %v456_v16 = vpop.xlane.xlu1 %455 }
 0x472   : > { %844 = vrcp.f32 %v456_v16 }
 0x477   : > { %v590_v17 = vpop.f32.mrf.mxu0 }
 0x478   : > { %v845_v18 = vpop.eup %844  ;;  %v594_v19 = vmul.f32 0.35355338, %v590_v17 }
 0x479   : > { %v458_v20 = vmul.f32 %v845_v18, %v843_v9  ;;  %v506_v21 = vpop.xlane.xlu1 %505 }
 0x47a   : > { %v507_v22 = vsub.f32 %v503_v12, %v506_v21  ;;  %v595_v23 = vadd.f32 %v594_v19, %v975_v1  ;;  %v703_v12 = vsel %vm465_vm6, %v420_v10, 0 }
 0x47b   : > { %v459_v24 = vpack.c.bf16 %v458_v20, %v458_v20 }
 0x47c   : > { %v508_v25 = vmul.f32 1.442695, %v507_v22  ;;  %v596_v26 = vsel %vm426_vm7, %v595_v23, -inf }
 0x47d   : > { %802 = vmatmul.msk.bf16.vlgmr.msrb.gmra.mxu2 %vm426_vm7, %v459_v24  ;;  %597 = vmax.xlane.f32.xlu0 %v596_v26 }
 0x47e   : > { %846 = vpow2.f32 %v508_v25  ;;  %662 = vmatpush.bf16.xpose.msrb.mxu2 %v579_v54 }
 0x47f   : > { %v592_v27 = vpop.f32.mrf.mxu0 }
 0x484   : > { %v847_v28 = vpop.eup %846 }
 0x485   : > { %v510_v29 = vsel %vm426_vm7, %v847_v28, 0.0 }
 0x486   : > { %511 = vadd.xlane.f32.xlu2 %v510_v29 }
 0x4f0   : > { %v598_v46 = vpop.xlane.xlu0 %597 }
 0x4f1   : > { %v599_v47 = vsub.f32 %v595_v23, %v598_v46 }
 0x4f3   : > { %v600_v48 = vmul.f32 1.442695, %v599_v47 }
 0x4f9   : > { %v512_v31 = vpop.xlane.xlu2 %511 }
 0x4fa   : > { %848 = vrcp.f32 %v512_v31 }
 0x4fb   : > { %850 = vpow2.f32 %v600_v48 }
 0x500   : > { %v849_v32 = vpop.eup %848  ;;  %v478_v33 = vpop.f32.mrf.mxu2 }
 0x501   : > { %v514_v34 = vmul.f32 %v849_v32, %v847_v28  ;;  %v482_v35 = vpack.c.bf16 %v478_v33, %v478_v33  ;;  %v851_v54 = vpop.eup %850 }
 0x502   : > { %v602_v55 = vsel %vm426_vm7, %v851_v54, 0.0 }
 0x503   : > { %v515_v36 = vpack.c.bf16 %v514_v34, %v514_v34  ;;  %806 = vmatmul.msk.bf16.vlgmr.msra.gmra.mxu2 %vm426_vm7, %v482_v35 }
 0x505   : > { %804 = vmatmul.msk.bf16.vlgmr.msrb.gmra.mxu1 %vm426_vm7, %v515_v36 }
 0x508   : > { %v480_v37 = vpop.f32.mrf.mxu2 }
 0x513   : > { %810 = vmatmul.msk.bf16.vlgmr.msrb.gmra.mxu2 %vm426_vm7, %v651_v38 }
 0x582   : > { %v528_v41 = vpop.f32.mrf.mxu1 }
 0x583   : > { %v532_v42 = vpack.c.bf16 %v528_v41, %v528_v41 }
 0x585   : > { %805 = vmatmul.msk.bf16.vlgmr.msrb.gmra.mxu3 %vm426_vm7, %v532_v42 }
 0x586   : > { %v567_v43 = vpop.f32.mrf.mxu2 }
 0x58a   : > { %v530_v44 = vpop.f32.mrf.mxu1 }
 0x58e   : > { %v569_v45 = vpop.f32.mrf.mxu2 }
 0x596   : > { %v664_v49 = vpop.f32.mrf.mxu2 }
 0x597   : > { %v668_v50 = vmul.f32 0.35355338, %v664_v49 }
 0x599   : > { %v669_v51 = vadd.f32 %v668_v50, %v975_v1 }
 0x59b   : > { %v670_v52 = vsel %vm426_vm7, %v669_v51, -inf }
 0x59c   : > { %671 = vmax.xlane.f32.xlu1 %v670_v52 }
 0x59e   : > { %v666_v53 = vpop.f32.mrf.mxu2 }
 0x5a4   : > { %603 = vadd.xlane.f32.xlu1 %v602_v55 }
 0x608   : > { %v548_v56 = vpop.f32.mrf.mxu3 }
 0x609   : > { %v568_v20 = vadd.f32 %v567_v43, %v548_v56 }
 0x60f   : > { %v672_v57 = vpop.xlane.xlu1 %671 }
 0x610   : > { %v673_v58 = vsub.f32 %v669_v51, %v672_v57  ;;  %v550_v59 = vpop.f32.mrf.mxu3 }
 0x612   : > { %v674_v60 = vmul.f32 1.442695, %v673_v58 }
 0x614   : > { %852 = vpow2.f32 %v674_v60 }
 0x617   : > { %v604_v63 = vpop.xlane.xlu1 %603 }
 0x618   : > { %854 = vrcp.f32 %v604_v63 }
 0x61a   : > { %v853_v61 = vpop.eup %852 }
 0x61b   : > { %v676_v62 = vsel %vm426_vm7, %v853_v61, 0.0 }
 0x61c   : > { %677 = vadd.xlane.f32.xlu1 %v676_v62 }
 0x61e   : > { %v855_v2 = vpop.eup %854 }
 0x61f   : > { %v606_v4 = vmul.f32 %v855_v2, %v851_v54 }
 0x621   : > { %v607_v8 = vpack.c.bf16 %v606_v4, %v606_v4 }
 0x635   : > { %608 = vrot.lane.b32.xlu1 %v958_v30, %s875_s12  ;;  %v419_v30 = vld [vmem:[%s1030_s3 + $0x8] sm:$0xf] }
 0x636   : > { %v634_v11 = vsel %vm465_vm6, %v419_v30, 0 }
 0x637   : > { %643 = vmatpush.bf16.msra.mxu3 %v634_v11 }
 0x68f   : > { %v678_v1 = vpop.xlane.xlu1 %677 }
 0x690   : > { %856 = vrcp.f32 %v678_v1 }
 0x696   : > { %v857_v3 = vpop.eup %856 }
 0x697   : > { %v680_v5 = vmul.f32 %v857_v3, %v853_v61 }
 0x699   : > { %v681_v9 = vpack.c.bf16 %v680_v5, %v680_v5 }
 0x6a7   : > { %v609_v6 = vpop.permute.xlu1 %608 }
 0x6a8   : > { %v614_v7 = vsel %vm465_vm6, %v609_v6, 0 }
 0x6a9   : > { %623 = vmatpush.bf16.msra.mxu1 %v614_v7  ;;  %692 = vmatpush.bf16.msrb.mxu0 %v614_v7 }
 0x6ac   : > { %808 = vmatmul.msk.bf16.vlgmr.msra.gmra.mxu1 %vm426_vm7, %v607_v8  ;;  %811 = vmatmul.msk.bf16.vlgmr.msrb.gmra.mxu0 %vm426_vm7, %v681_v9 }
 0x6ad   : > { %712 = vmatpush.bf16.msrb.mxu1 %v703_v12 }
 0x729   : > { %v625_v13 = vpop.f32.mrf.mxu1  ;;  %v694_v14 = vpop.f32.mrf.mxu0 }
 0x72a   : > { %v629_v15 = vpack.c.bf16 %v625_v13, %v625_v13  ;;  %v698_v16 = vpack.c.bf16 %v694_v14, %v694_v14 }
 0x72c   : > { %809 = vmatmul.msk.bf16.vlgmr.msra.gmra.mxu3 %vm426_vm7, %v629_v15  ;;  %812 = vmatmul.msk.bf16.vlgmr.msrb.gmra.mxu1 %vm426_vm7, %v698_v16 }
 0x731   : > { %v627_v17 = vpop.f32.mrf.mxu1  ;;  %v696_v18 = vpop.f32.mrf.mxu0 }
 0x7a9   : > { %v714_v19 = vpop.f32.mrf.mxu1 }
 0x7af   : > { %v645_v21 = vpop.f32.mrf.mxu3 }
 0x7b0   : > { %v649_v22 = vadd.f32 %v645_v21, %v568_v20 }
 0x7b1   : > { %v716_v23 = vpop.f32.mrf.mxu1 }
 0x7b2   : > { %v718_v24 = vadd.f32 %v714_v19, %v649_v22 }
 0x7b4   : > { %v719_v25 = vadd.f32 %v718_v24, %v932_v0 }
 0x7b6   : > { %720 = vst.msk [vmem:[%s273_s19] sm:$0xff] %vm277_vm0, %v719_v25 }
 0x7b7   : > { %v647_v26 = vpop.f32.mrf.mxu3 }
 0x7b8 PF: > { %s17_s24 = sadd.s32 1, %s864_s24  }
 0x7b9   : > { %p14_p4 = scmp.ge.s32.totalorder %s17_s24, 4  }
 0x7bb   :  { %16 = sbr.rel (!%p14_p4) target bundleno = 1 (0x1), region = 78 }

</bundles_post_ra>
